<compile_context>
chip_gen: v6e
topology: v6e:2x2x1
jax: 0.10.0
libtpu: 0.0.40
codegen_flags: <defaults>
</compile_context>

<pallas_src>
import jax
import jax.numpy as jnp
from jax.experimental import pallas as pl
from jax.experimental.pallas import tpu as pltpu

# ---- model config (consistent with DuelingNet(input_dim, output_dim, net_arch)) ----
BATCH = 2
INPUT_DIM = 16
OUTPUT_DIM = 8
NET_ARCH = [32, 32]
H1, H2 = NET_ARCH
LANES = 128                      # lane-dense width of all packed weights / hidden layers

# Row layout of the single packed parameter buffer (all offsets 8-aligned).
W1_R0 = 0                        # rows [0, 16)    : W1  (16, 128)
W2_R0 = W1_R0 + INPUT_DIM        # rows [16, 144)  : W2  (128, 128) block-diagonal
W3_R0 = W2_R0 + LANES            # rows [144, 272) : W3' (128, 128) dueling-folded
B_R0 = W3_R0 + LANES             # rows [272, 275) : bias table (3, 128)
P_ROWS = 280                     # padded to a multiple of 8


def dueling_kernel(x_ref, p_ref, q_ref):
    x = x_ref[...]                                     # (TB, 16)

    w1 = p_ref[W1_R0:W1_R0 + INPUT_DIM, :]             # (16, 128)
    w2 = p_ref[W2_R0:W2_R0 + LANES, :]                 # (128, 128)
    w3 = p_ref[W3_R0:W3_R0 + LANES, :]                 # (128, 128)
    b1 = p_ref[B_R0 + 0:B_R0 + 1, :]                   # (1, 128)
    b2 = p_ref[B_R0 + 1:B_R0 + 2, :]                   # (1, 128)
    b3 = p_ref[B_R0 + 2:B_R0 + 3, :]                   # (1, 128)

    # layer 1: one MXU push computes value + advantage hidden layers (lanes 64+ stay 0).
    h = jnp.maximum(jnp.dot(x, w1, preferred_element_type=jnp.float32) + b1, 0.0)
    # layer 2: block-diagonal weights keep the two paths independent. (Dropout = identity.)
    g = jnp.maximum(jnp.dot(h, w2, preferred_element_type=jnp.float32) + b2, 0.0)
    # layer 3: dueling combine is pre-folded into w3/b3, so cols [0, OUTPUT_DIM) ARE q.
    q = jnp.dot(g, w3, preferred_element_type=jnp.float32) + b3        # (TB, 128)

    if q_ref.shape[-1] == LANES:        # lane-dense slab output (full-width stores)
        q_ref[...] = q
    else:                               # narrow (TB, OUTPUT_DIM) output
        q_ref[...] = q[:, :q_ref.shape[-1]]


def _round_up(n, m):
    return ((n + m - 1) // m) * m


def dueling_forward(x, params_packed, *, batch_tile=2048, lane_dense_out=False):
    """x: (B, INPUT_DIM) f32.  params_packed: (P_ROWS, LANES) from pack_params().
    Returns (B, OUTPUT_DIM) f32 Q-values."""
    B = x.shape[0]
    if B <= 8:
        tb = B                                      # single grid step for tiny batches
    else:
        # >= 2 grid steps so both v7x TensorCores get work; cap by batch_tile.
        tb = min(batch_tile, _round_up(pl.cdiv(B, 2), 8))
    bp = _round_up(B, tb)
    if bp != B:                                     # pad only when B isn't a tile multiple
        x = jnp.pad(x, ((0, bp - B), (0, 0)))
    grid = (bp // tb,)
    out_w = LANES if lane_dense_out else OUTPUT_DIM

    flops = 2 * bp * (INPUT_DIM * LANES + LANES * LANES + LANES * LANES)
    bytes_accessed = 4 * (bp * INPUT_DIM + P_ROWS * LANES + bp * out_w)

    q = pl.pallas_call(
        dueling_kernel,
        out_shape=jax.ShapeDtypeStruct((bp, out_w), jnp.float32),
        grid_spec=pltpu.PrefetchScalarGridSpec(
            num_scalar_prefetch=0,
            grid=grid,
            in_specs=[
                pl.BlockSpec((tb, INPUT_DIM), lambda i: (i, 0)),   # stream x per batch tile
                pl.BlockSpec((P_ROWS, LANES), lambda i: (0, 0)),   # one VMEM-resident param buf
            ],
            out_specs=pl.BlockSpec((tb, out_w), lambda i: (i, 0)),
        ),
        compiler_params=pltpu.CompilerParams(
            dimension_semantics=("parallel",),        # batch tiles are independent
            vmem_limit_bytes=48 * 1024 * 1024,        # v5e scoped default (16 MiB) is too small
        ),
        cost_estimate=pl.CostEstimate(
            flops=flops, transcendentals=0, bytes_accessed=bytes_accessed),
    )(x, params_packed)

    if bp != B:
        q = q[:B]
    return q[:, :OUTPUT_DIM] if lane_dense_out else q


def init_params(key):
    """Deterministic synthetic parameters matching nn.Linear shapes (stored transposed)."""
    ks = jax.random.split(key, 6)

    def lin(k, d_in, d_out, scale=0.1):
        kw, kb = jax.random.split(k)
        w = jax.random.normal(kw, (d_in, d_out), jnp.float32) * scale
        b = jax.random.normal(kb, (1, d_out), jnp.float32) * scale
        return w, b

    p = {}
    # value net: input -> H1 -> H2 -> 1
    p["w1v"], p["b1v"] = lin(ks[0], INPUT_DIM, H1)
    p["w2v"], p["b2v"] = lin(ks[1], H1, H2)
    p["w3v"], p["b3v"] = lin(ks[2], H2, 1)
    # advantage net: input -> H1 -> H2 -> OUTPUT_DIM
    p["w1a"], p["b1a"] = lin(ks[3], INPUT_DIM, H1)
    p["w2a"], p["b2a"] = lin(ks[4], H1, H2)
    p["w3a"], p["b3a"] = lin(ks[5], H2, OUTPUT_DIM)
    return p


def pack_params(p):
    """Fuse the 12 Linear params (value + advantage nets) and the dueling combine
    into ONE (P_ROWS, 128) f32 buffer."""
    # layer 1: [w1v | w1a | 0]
    w1 = jnp.zeros((INPUT_DIM, LANES), jnp.float32)
    w1 = w1.at[:, :H1].set(p["w1v"]).at[:, H1:2 * H1].set(p["w1a"])

    # layer 2: block-diagonal, zero elsewhere
    w2 = jnp.zeros((LANES, LANES), jnp.float32)
    w2 = w2.at[:H1, :H2].set(p["w2v"]).at[H1:2 * H1, H2:2 * H2].set(p["w2a"])

    # layer 3 with the dueling combine folded in:
    #   q_j = g_v @ w3v + g_a @ (w3a[:, j] - mean_k w3a[:, k]) + (b3v + b3a_j - mean(b3a))
    w3a_centered = p["w3a"] - jnp.mean(p["w3a"], axis=1, keepdims=True)      # (H2, OUT)
    b3_combined = p["b3v"][0, 0] + p["b3a"][0] - jnp.mean(p["b3a"])          # (OUT,)
    w3 = jnp.zeros((LANES, LANES), jnp.float32)
    w3 = w3.at[:H2, :OUTPUT_DIM].set(jnp.broadcast_to(p["w3v"], (H2, OUTPUT_DIM)))
    w3 = w3.at[H2:2 * H2, :OUTPUT_DIM].set(w3a_centered)

    # bias table: row 0 = [b1v | b1a | 0], row 1 = [b2v | b2a | 0], row 2 = combined layer-3 bias
    b = jnp.zeros((3, LANES), jnp.float32)
    b = b.at[0, :H1].set(p["b1v"][0]).at[0, H1:2 * H1].set(p["b1a"][0])
    b = b.at[1, :H2].set(p["b2v"][0]).at[1, H2:2 * H2].set(p["b2a"][0])
    b = b.at[2, :OUTPUT_DIM].set(b3_combined)

    packed = jnp.zeros((P_ROWS, LANES), jnp.float32)
    packed = packed.at[W1_R0:W1_R0 + INPUT_DIM, :].set(w1)
    packed = packed.at[W2_R0:W2_R0 + LANES, :].set(w2)
    packed = packed.at[W3_R0:W3_R0 + LANES, :].set(w3)
    packed = packed.at[B_R0:B_R0 + 3, :].set(b)
    # NOTE: params/x could be stored bf16 (MXU-native, halves DMA bytes) if downstream
    # tolerance allows; kept f32 here for the tight reference check.
    return packed


def reference_forward(x, p):
    """Pure-JAX reference of the original (unfused) DuelingNet forward."""
    def mlp(x, w1, b1, w2, b2, w3, b3):
        h = jnp.maximum(x @ w1 + b1, 0.0)
        h = jnp.maximum(h @ w2 + b2, 0.0)
        return h @ w3 + b3
    v = mlp(x, p["w1v"], p["b1v"], p["w2v"], p["b2v"], p["w3v"], p["b3v"])
    a = mlp(x, p["w1a"], p["b1a"], p["w2a"], p["b2a"], p["w3a"], p["b3a"])
    return v + (a - jnp.mean(a, axis=1, keepdims=True))


if __name__ == "__main__":
    key = jax.random.PRNGKey(0)
    kx, kp = jax.random.split(key)
    x = jax.random.normal(kx, (BATCH, INPUT_DIM), jnp.float32)
    params = init_params(kp)
    packed = pack_params(params)

    q = dueling_forward(x, packed)
    jax.block_until_ready(q)

    q_ref = reference_forward(x, params)
    assert q.shape == (BATCH, OUTPUT_DIM)
    # Default TPU matmul precision rounds f32 operands to bf16; the pre-folded W3'
    # rounds (w3a - mean) as one number while the reference rounds the pieces, so a
    # small numerical slack is expected (per perf review: loosen tolerance, don't
    # suspect the packing).
    assert jnp.allclose(q, q_ref, atol=5e-3, rtol=5e-3), "mismatch vs JAX reference"
    print("KERNEL_OK")
</pallas_src>

<mosaic_0001>
module attributes {stable_mosaic.version = 11 : i64} {
  func.func @dueling_kernel(%arg0: i32, %arg1: memref<2x16xf32, #tpu.memory_space<vmem>>, %arg2: memref<280x128xf32, #tpu.memory_space<vmem>>, %arg3: memref<2x8xf32, #tpu.memory_space<vmem>>) attributes {dimension_semantics = [#tpu.dimension_semantics<parallel>], iteration_bounds = array<i64: 1>, scalar_prefetch = 0 : i64, scratch_operands = 0 : i64, tpu.core_type = #tpu.core_type<tc>, window_params = [{transform_indices = @transform_0, window_bounds = array<i64: 2, 16>}, {pipeline_mode = #tpu.pipeline_mode<synchronous>, transform_indices = @transform_1, window_bounds = array<i64: 280, 128>}, {transform_indices = @transform_2, window_bounds = array<i64: 2, 8>}]} {
    %c0 = arith.constant 0 : index
    %c0_0 = arith.constant 0 : index
    %0 = vector.load %arg1[%c0, %c0_0] : memref<2x16xf32, #tpu.memory_space<vmem>>, vector<2x16xf32>
    %c0_1 = arith.constant 0 : index
    %c0_2 = arith.constant 0 : index
    %1 = vector.load %arg2[%c0_1, %c0_2] : memref<280x128xf32, #tpu.memory_space<vmem>>, vector<16x128xf32>
    %c16 = arith.constant 16 : index
    %c0_3 = arith.constant 0 : index
    %2 = vector.load %arg2[%c16, %c0_3] : memref<280x128xf32, #tpu.memory_space<vmem>>, vector<128x128xf32>
    %c144 = arith.constant 144 : index
    %c0_4 = arith.constant 0 : index
    %3 = vector.load %arg2[%c144, %c0_4] : memref<280x128xf32, #tpu.memory_space<vmem>>, vector<128x128xf32>
    %c272 = arith.constant 272 : index
    %c0_5 = arith.constant 0 : index
    %4 = vector.load %arg2[%c272, %c0_5] : memref<280x128xf32, #tpu.memory_space<vmem>>, vector<1x128xf32>
    %c273 = arith.constant 273 : index
    %c0_6 = arith.constant 0 : index
    %5 = vector.load %arg2[%c273, %c0_6] : memref<280x128xf32, #tpu.memory_space<vmem>>, vector<1x128xf32>
    %c274 = arith.constant 274 : index
    %c0_7 = arith.constant 0 : index
    %6 = vector.load %arg2[%c274, %c0_7] : memref<280x128xf32, #tpu.memory_space<vmem>>, vector<1x128xf32>
    %cst = arith.constant dense<0.000000e+00> : vector<2x128xf32>
    %7 = tpu.matmul %0, %1, %cst {dimension_numbers = #tpu.dot_dimension_numbers<[1], [0], [0], [1], [0, 0, 1, 1], [], []>} : vector<2x16xf32>, vector<16x128xf32>, vector<2x128xf32> -> vector<2x128xf32>
    %8 = vector.broadcast %4 : vector<1x128xf32> to vector<2x128xf32>
    %9 = arith.addf %7, %8 : vector<2x128xf32>
    %cst_8 = arith.constant 0.000000e+00 : f32
    %10 = vector.broadcast %cst_8 : f32 to vector<2x128xf32>
    %11 = arith.maximumf %9, %10 : vector<2x128xf32>
    %cst_9 = arith.constant dense<0.000000e+00> : vector<2x128xf32>
    %12 = tpu.matmul %11, %2, %cst_9 {dimension_numbers = #tpu.dot_dimension_numbers<[1], [0], [0], [1], [0, 0, 1, 1], [], []>} : vector<2x128xf32>, vector<128x128xf32>, vector<2x128xf32> -> vector<2x128xf32>
    %13 = vector.broadcast %5 : vector<1x128xf32> to vector<2x128xf32>
    %14 = arith.addf %12, %13 : vector<2x128xf32>
    %cst_10 = arith.constant 0.000000e+00 : f32
    %15 = vector.broadcast %cst_10 : f32 to vector<2x128xf32>
    %16 = arith.maximumf %14, %15 : vector<2x128xf32>
    %cst_11 = arith.constant dense<0.000000e+00> : vector<2x128xf32>
    %17 = tpu.matmul %16, %3, %cst_11 {dimension_numbers = #tpu.dot_dimension_numbers<[1], [0], [0], [1], [0, 0, 1, 1], [], []>} : vector<2x128xf32>, vector<128x128xf32>, vector<2x128xf32> -> vector<2x128xf32>
    %18 = vector.broadcast %6 : vector<1x128xf32> to vector<2x128xf32>
    %19 = arith.addf %17, %18 : vector<2x128xf32>
    %20 = vector.extract_strided_slice %19 {offsets = [0, 0], sizes = [2, 8], strides = [1, 1]} : vector<2x128xf32> to vector<2x8xf32>
    %c0_12 = arith.constant 0 : index
    %c0_13 = arith.constant 0 : index
    %21 = vector.load %arg3[%c0_12, %c0_13] : memref<2x8xf32, #tpu.memory_space<vmem>>, vector<2x8xf32>
    tpu.vector_store %arg3[%c0_12, %c0_13], %20 {strides = array<i32>} : memref<2x8xf32, #tpu.memory_space<vmem>>, vector<2x8xf32>,
    return
  }
  func.func @transform_0(%arg0: i32) -> (i32, i32) {
    %c0_i32 = arith.constant 0 : i32
    %c0_i32_0 = arith.constant 0 : i32
    return %arg0, %c0_i32 : i32, i32
  }
  func.func @transform_1(%arg0: i32) -> (i32, i32) {
    %c0_i32 = arith.constant 0 : i32
    %c0_i32_0 = arith.constant 0 : i32
    %c0_i32_1 = arith.constant 0 : i32
    return %c0_i32, %c0_i32_0 : i32, i32
  }
  func.func @transform_2(%arg0: i32) -> (i32, i32) {
    %c0_i32 = arith.constant 0 : i32
    %c0_i32_0 = arith.constant 0 : i32
    return %arg0, %c0_i32 : i32, i32
  }
}

</mosaic_0001>

<bundles_post_ra>
// kernel: tpu_custom_call.1
= control target key start
LH: loop header
LB: loop body
LE: loop exit
PB: predicated region body
PF: predicated region fallthrough
CT: control target
= control target key end

     0   :  { %7 = vsyncpa [#allocation3], 0  ;;  %s584_s0 = inlined_call_operand.hbm [shape: f32[2,16], index: 0, kind: input, shape index: {}]   ;;  %s585_s1 = inlined_call_operand.hbm [shape: f32[280,128], index: 1, kind: input, shape index: {}]   ;;  %s586_s2 = inlined_call_operand.hbm [shape: f32[2,8], index: 2, kind: output, shape index: {}]  }
   0x1   :  { %8 = vsyncpa [#allocation6], 0 }
   0x2   :  { %9 = vsyncpa [#allocation4], 0  ;;  %s513_s9 = smov [#allocation2]   ;;  %s514_s11 = smov [#allocation5]  }
   0x3   :  { %s16_s10 = sshll.u32 %s513_s9, 4  ;;  %s25_s12 = sshll.u32 %s514_s11, 4  ;;  %s17_s10 = int_to_ptr.vmem [resolvable:$true] %s16_s10  ;;  %s26_s12 = int_to_ptr.vmem [resolvable:$true] %s25_s12 }
   0x4   :  { %s455_s13 = scalar_lea.vmem %s17_s10, 32  ;;  %p460_p1 = scmp.lt.s32.totalorder %s17_s10, %s17_s10 }
   0x5   :  { %p456_p0 = scmp.ne.s32.totalorder %s17_s10, %s455_s13  ;;  %p461_p2 = scmp.lt.s32.totalorder %s455_s13, %s455_s13 }
   0x7   :  { %p462_p3 = por %p461_p2, %p460_p1 }
   0x9   :  { %p463_p4 = pnand %p462_p3, %p456_p0 }
   0xb   :  { %466 = shalt.err (!%p463_p4)
}
   0xc   :  { %19 = dma.hbm_to_vmem [thread:$0]  %s584_s0, 32, %s17_s10, [#allocation3]  }
   0xd   :  { %s475_s16 = scalar_lea.vmem %s26_s12, 4480  ;;  %p480_p6 = scmp.lt.s32.totalorder %s26_s12, %s26_s12 }
   0xe   :  { %p476_p5 = scmp.ne.s32.totalorder %s26_s12, %s475_s16  ;;  %p481_p7 = scmp.lt.s32.totalorder %s475_s16, %s475_s16 }
  0x10   :  { %p482_p8 = por %p481_p7, %p480_p6 }
  0x12   :  { %p483_p9 = pnand %p482_p8, %p476_p5 }
  0x14   :  { %486 = shalt.err (!%p483_p9)
}
  0x15   :  { %s515_s17 = smov 128   ;;  %s516_s18 = smov 8  }
  0x16   :  { %31 = dma.hbm_to_vmem [thread:$0]  %s585_s1, 4480, %s26_s12, [#allocation6], %s515_s17, %s515_s17, %s516_s18  }
  0x17   :  { %507 = dma.done.wait [#allocation3], 32  }
  0x18   :  { %508 = vsyncadd [#allocation3], 4294967264 }
  0x19   :  { %509 = dma.done.wait [#allocation6], 4480  }
  0x1a   :  { %510 = vsyncadd [#allocation6], 4294962816  ;;  %v517_v0 = vmov 0.0   ;;  %vm518_vm0 = vmmov 0   ;;  %v40_v1 = vld [vmem:[#allocation5 + $0x8] sm:$0xff]  ;;  %v39_v2 = vld [vmem:[#allocation5] sm:$0xff] }
  0x1b   :  { %363 = vmatprep.subr.mxu0 %v517_v0  ;;  %367 = vmatprep.mubr.msk.f32.mxu0 %vm518_vm0, %v517_v0  ;;  %v38_v3 = vld [vmem:[#allocation2] sm:$0x3]  ;;  %vm80_vm1 = vcmask 130048   ;;  %v56_v4 = vld [vmem:[#allocation5 + $0x88] sm:$0xff]  ;;  %v55_v5 = vld [vmem:[#allocation5 + $0x80] sm:$0xff]  ;;  %s519_s0 = smov [#allocation7]  }
  0x1c   :  { %370 = vmatprep.subr.mxu1 %v517_v0  ;;  %402 = vmatprep.mubr.msk.f32.mxu1 %vm518_vm0, %v517_v0  ;;  %v54_v6 = vld [vmem:[#allocation5 + $0x78] sm:$0xff]  ;;  %v53_v7 = vld [vmem:[#allocation5 + $0x70] sm:$0xff]  ;;  %v52_v8 = vld [vmem:[#allocation5 + $0x68] sm:$0xff]  ;;  %s312_s1 = sshll.u32 %s519_s0, 4  ;;  %vm304_vm2 = vcmask 58368   ;;  %s313_s1 = int_to_ptr.vmem [resolvable:$true] %s312_s1 }
  0x1d   :  { %364 = vmatpush3.msra.mxu0 %v40_v1  ;;  %371 = vmatpush3.msra.mxu1 %v56_v4  ;;  %v51_v9 = vld [vmem:[#allocation5 + $0x60] sm:$0xff]  ;;  %v50_v10 = vld [vmem:[#allocation5 + $0x58] sm:$0xff]  ;;  %v49_v11 = vld [vmem:[#allocation5 + $0x50] sm:$0xff]  ;;  %s487_s21 = scalar_lea.vmem %s313_s1, 32  ;;  %p492_p11 = scmp.lt.s32.totalorder %s313_s1, %s313_s1 }
  0x1e   :  { %365 = vmatprep.subr.mxu0 %v517_v0  ;;  %372 = vmatprep.subr.mxu1 %v517_v0  ;;  %v48_v12 = vld [vmem:[#allocation5 + $0x48] sm:$0xff]  ;;  %v47_v13 = vld [vmem:[#allocation5 + $0x40] sm:$0xff]  ;;  %v46_v14 = vld [vmem:[#allocation5 + $0x38] sm:$0xff]  ;;  %p488_p10 = scmp.ne.s32.totalorder %s313_s1, %s487_s21  ;;  %p493_p12 = scmp.lt.s32.totalorder %s487_s21, %s487_s21 }
  0x1f   :  { %366 = vmatpush3.msra.mxu0 %v39_v2  ;;  %373 = vmatpush3.msra.mxu1 %v55_v5  ;;  %v45_v15 = vld [vmem:[#allocation5 + $0x30] sm:$0xff]  ;;  %v44_v16 = vld [vmem:[#allocation5 + $0x28] sm:$0xff]  ;;  %v43_v17 = vld [vmem:[#allocation5 + $0x20] sm:$0xff] }
  0x20   :  { %368 = vmatmul.mubr.msk.f32.vlgmr.msra.gmra.mxu0 %vm80_vm1, %v38_v3  ;;  %374 = vmatprep.subr.mxu1 %v517_v0  ;;  %v42_v18 = vld [vmem:[#allocation5 + $0x18] sm:$0xff]  ;;  %v41_v19 = vld [vmem:[#allocation5 + $0x10] sm:$0xff]  ;;  %v72_v20 = vld [vmem:[#allocation5 + $0x108] sm:$0xff]  ;;  %p494_p13 = por %p493_p12, %p492_p11 }
  0x21   :  { %405 = vmatprep.subr.mxu0 %v517_v0  ;;  %375 = vmatpush3.msra.mxu1 %v54_v6  ;;  %v71_v21 = vld [vmem:[#allocation5 + $0x100] sm:$0xff]  ;;  %v70_v22 = vld [vmem:[#allocation5 + $0xf8] sm:$0xff]  ;;  %v69_v23 = vld [vmem:[#allocation5 + $0xf0] sm:$0xff] }
  0x22   :  { %437 = vmatprep.mubr.msk.f32.mxu0 %vm518_vm0, %v517_v0  ;;  %376 = vmatprep.subr.mxu1 %v517_v0  ;;  %v68_v24 = vld [vmem:[#allocation5 + $0xe8] sm:$0xff]  ;;  %v67_v25 = vld [vmem:[#allocation5 + $0xe0] sm:$0xff]  ;;  %v66_v26 = vld [vmem:[#allocation5 + $0xd8] sm:$0xff]  ;;  %p495_p0 = pnand %p494_p13, %p488_p10 }
  0x23   :  { %377 = vmatpush3.msra.mxu1 %v53_v7  ;;  %406 = vmatpush3.msra.mxu0 %v72_v20  ;;  %v65_v27 = vld [vmem:[#allocation5 + $0xd0] sm:$0xff]  ;;  %v64_v28 = vld [vmem:[#allocation5 + $0xc8] sm:$0xff]  ;;  %v63_v29 = vld [vmem:[#allocation5 + $0xc0] sm:$0xff] }
  0x24   :  { %378 = vmatprep.subr.mxu1 %v517_v0  ;;  %407 = vmatprep.subr.mxu0 %v517_v0  ;;  %v62_v30 = vld [vmem:[#allocation5 + $0xb8] sm:$0xff]  ;;  %v61_v31 = vld [vmem:[#allocation5 + $0xb0] sm:$0xff]  ;;  %v60_v32 = vld [vmem:[#allocation5 + $0xa8] sm:$0xff] }
  0x25   :  { %379 = vmatpush3.msra.mxu1 %v52_v8  ;;  %408 = vmatpush3.msra.mxu0 %v71_v21  ;;  %v322_v33 = vld [vmem:[#allocation5 + $0x110] ss:$0 sm:$0xff]  ;;  %v59_v38 = vld [vmem:[#allocation5 + $0xa0] sm:$0xff]  ;;  %v58_v39 = vld [vmem:[#allocation5 + $0x98] sm:$0xff] }
  0x26   :  { %380 = vmatprep.subr.mxu1 %v517_v0  ;;  %409 = vmatprep.subr.mxu0 %v517_v0  ;;  %v57_v40 = vld [vmem:[#allocation5 + $0x90] sm:$0xff] }
  0x27   :  { %381 = vmatpush3.msra.mxu1 %v51_v9  ;;  %410 = vmatpush3.msra.mxu0 %v70_v22  ;;  %v324_v41 = vld [vmem:[#allocation5 + $0x111] ss:$0 sm:$0xff]  ;;  %v325_v46 = vld [vmem:[#allocation5 + $0x112] ss:$0 sm:$0xff] }
  0x28   :  { %382 = vmatprep.subr.mxu1 %v517_v0  ;;  %411 = vmatprep.subr.mxu0 %v517_v0 }
  0x29   :  { %383 = vmatpush3.msra.mxu1 %v50_v10  ;;  %412 = vmatpush3.msra.mxu0 %v69_v23 }
  0x2a   :  { %384 = vmatprep.subr.mxu1 %v517_v0  ;;  %413 = vmatprep.subr.mxu0 %v517_v0 }
  0x2b   :  { %385 = vmatpush3.msra.mxu1 %v49_v11  ;;  %414 = vmatpush3.msra.mxu0 %v68_v24 }
  0x2c   :  { %386 = vmatprep.subr.mxu1 %v517_v0  ;;  %415 = vmatprep.subr.mxu0 %v517_v0 }
  0x2d   :  { %387 = vmatpush3.msra.mxu1 %v48_v12  ;;  %416 = vmatpush3.msra.mxu0 %v67_v25 }
  0x2e   :  { %388 = vmatprep.subr.mxu1 %v517_v0  ;;  %417 = vmatprep.subr.mxu0 %v517_v0 }
  0x2f   :  { %389 = vmatpush3.msra.mxu1 %v47_v13  ;;  %418 = vmatpush3.msra.mxu0 %v66_v26 }
  0x30   :  { %390 = vmatprep.subr.mxu1 %v517_v0  ;;  %419 = vmatprep.subr.mxu0 %v517_v0 }
  0x31   :  { %391 = vmatpush3.msra.mxu1 %v46_v14  ;;  %420 = vmatpush3.msra.mxu0 %v65_v27 }
  0x32   :  { %392 = vmatprep.subr.mxu1 %v517_v0  ;;  %421 = vmatprep.subr.mxu0 %v517_v0 }
  0x33   :  { %393 = vmatpush3.msra.mxu1 %v45_v15  ;;  %422 = vmatpush3.msra.mxu0 %v64_v28 }
  0x34   :  { %394 = vmatprep.subr.mxu1 %v517_v0  ;;  %423 = vmatprep.subr.mxu0 %v517_v0 }
  0x35   :  { %395 = vmatpush3.msra.mxu1 %v44_v16  ;;  %424 = vmatpush3.msra.mxu0 %v63_v29 }
  0x36   :  { %396 = vmatprep.subr.mxu1 %v517_v0  ;;  %425 = vmatprep.subr.mxu0 %v517_v0 }
  0x37   :  { %397 = vmatpush3.msra.mxu1 %v43_v17  ;;  %426 = vmatpush3.msra.mxu0 %v62_v30 }
  0x38   :  { %398 = vmatprep.subr.mxu1 %v517_v0  ;;  %427 = vmatprep.subr.mxu0 %v517_v0 }
  0x39   :  { %399 = vmatpush3.msra.mxu1 %v42_v18  ;;  %428 = vmatpush3.msra.mxu0 %v61_v31 }
  0x3a   :  { %400 = vmatprep.subr.mxu1 %v517_v0  ;;  %429 = vmatprep.subr.mxu0 %v517_v0 }
  0x3b   :  { %401 = vmatpush3.msra.mxu1 %v41_v19  ;;  %430 = vmatpush3.msra.mxu0 %v60_v32 }
  0x3c   :  { %431 = vmatprep.subr.mxu0 %v517_v0 }
  0x3d   :  { %432 = vmatpush3.msra.mxu0 %v59_v38 }
  0x3e   :  { %433 = vmatprep.subr.mxu0 %v517_v0 }
  0x3f   :  { %434 = vmatpush3.msra.mxu0 %v58_v39 }
  0x40   :  { %435 = vmatprep.subr.mxu0 %v517_v0 }
  0x41   :  { %436 = vmatpush3.msra.mxu0 %v57_v40 }
  0xe0   :  { %v150_v34 = vpop.f32.mrf.mxu0 }
  0xe1   :  { %v151_v35 = vadd.f32 %v322_v33, %v150_v34 }
  0xe2   :  { %v369_v36 = vpop.f32.mrf.mxu0 }
  0xe3   :  { %v154_v37 = vmax.f32 %v151_v35, 0.0 }
  0xe5   :  { %403 = vmatmul.mubr.f32.vlgmr.msra.gmra.mxu1 %v154_v37 }
 0x1a5   :  { %v225_v42 = vpop.f32.mrf.mxu1 }
 0x1a6   :  { %v226_v43 = vadd.f32 %v324_v41, %v225_v42 }
 0x1a7   :  { %v404_v44 = vpop.f32.mrf.mxu1 }
 0x1a8   :  { %v229_v45 = vmax.f32 %v226_v43, 0.0 }
 0x1aa   :  { %438 = vmatmul.mubr.f32.vlgmr.msra.gmra.mxu0 %v229_v45 }
 0x26a   :  { %v300_v47 = vpop.f32.mrf.mxu0 }
 0x26b   :  { %v301_v48 = vadd.f32 %v325_v46, %v300_v47 }
 0x26c   :  { %v439_v49 = vpop.f32.mrf.mxu0 }
 0x26d   :  { %305 = vst.msk [vmem:[#allocation7] sm:$0x3] %vm304_vm2, %v301_v48 }
 0x26e   :  { %498 = shalt.err (!%p495_p0)
}
 0x26f   :  { %315 = dma.vmem_to_hbm [thread:$0]  %s313_s1, 32, %s586_s2, [#allocation4]  }
 0x270   :  { %511 = dma.done.wait [#allocation4], 32  }
 0x271   :  { %512 = vsyncadd [#allocation4], 4294967264 }
 0x272   :  { %319 = vsyncpa [#allocation3], 1 }
 0x273   :  { %320 = vsyncpa [#allocation6], 1 }
 0x274   :  { %321 = vsyncpa [#allocation4], 1 }

</bundles_post_ra>
